<compile_context>
chip_gen: v6e
topology: v6e:2x2x1
jax: 0.10.0
libtpu: 0.0.40
codegen_flags: <defaults>
</compile_context>

<pallas_src>
import functools

import jax
import jax.numpy as jnp
from jax.experimental import pallas as pl
from jax.experimental.pallas import tpu as pltpu

_LANES = 128
_TARGET_STEPS = 8                  # aim for ~8 pipeline steps per pallas_call
_BLOCK_FLOOR_BYTES = 512 * 1024    # keep per-step input blocks >= ~512 KiB


def _ceil_div(a, b):
    return -(-a // b)


def _round_up(a, m):
    return _ceil_div(a, m) * m


def _vmem_config():
    """Chip-aware VMEM budgeting: (working-set budget, base scoped limit,
    physical VMEM, two-TensorCore?)."""
    phys = 64 * 1024 * 1024
    try:
        phys = int(pltpu.get_tpu_info().vmem_capacity_bytes)
    except Exception:
        pass  # fall back to the conservative (v7x-sized) configuration
    if phys >= 96 * 1024 * 1024:            # v5e / v6e: 128 MiB physical VMEM
        return 48 * 1024 * 1024, 100 * 1024 * 1024, phys, False
    return 20 * 1024 * 1024, 40 * 1024 * 1024, phys, True   # v7x: 64 MiB, 2 TCs


def _bytes_per_row(n):
    # Per 128-lane row of a block (f32): double-buffered x in (2N) + y out (2N),
    # double-buffered gamma/beta (4), ~6 streamed (tb,128) f32 intermediates.
    return (4 * n + 12) * _LANES * 4


def _pick_tile_rows(d128, n, budget_bytes, want_even_steps):
    """Rows-of-128-lanes per block.  Multiple of 8 (or the full extent) to satisfy
    the (8,128) rule; the grid uses cdiv, so a ragged last block is fine."""
    if d128 <= 8:
        return d128                                   # single full-extent block

    tb_cap = max(8, (budget_bytes // _bytes_per_row(n)) // 8 * 8)

    tb_steps = _round_up(_ceil_div(d128, _TARGET_STEPS), 8)
    rows_floor = _round_up(_ceil_div(_BLOCK_FLOOR_BYTES, n * _LANES * 4), 8)
    tb = min(max(tb_steps, rows_floor), tb_cap)
    tb = max(tb, 8)
    if tb >= d128:
        return d128

    # 2-TC chips: prefer an even number of grid steps so both cores that split the
    # "parallel" axis get balanced work.
    if want_even_steps and _ceil_div(d128, tb) % 2 == 1:
        for cand in range(tb - 8, max(7, tb // 2 - 1), -8):
            if _ceil_div(d128, cand) % 2 == 0:
                tb = cand
                break
    return tb


def _batchnorm_kernel(x_ref, gamma_ref, beta_ref, y_ref, *, eps):
    # x_ref / y_ref: (N, tb, 128); gamma_ref / beta_ref: (1, tb, 128).
    n = x_ref.shape[0]
    inv_n = jnp.float32(1.0 / n)
    unroll = n if n <= 8 else 8
    zero = jnp.zeros(x_ref.shape[1:], jnp.float32)

    # Pass 1: mean over the batch axis, streamed one (tb,128) slab at a time.
    def sum_body(i, acc):
        return acc + x_ref[i].astype(jnp.float32)

    mean = jax.lax.fori_loop(0, n, sum_body, zero, unroll=unroll) * inv_n

    # Pass 2: biased variance (two-pass form avoids cancellation).
    def var_body(i, acc):
        d = x_ref[i].astype(jnp.float32) - mean
        return acc + d * d

    var = jax.lax.fori_loop(0, n, var_body, zero, unroll=unroll) * inv_n

    inv_std = jax.lax.rsqrt(var + jnp.float32(eps))          # EUP rsqrt
    scale = gamma_ref[0].astype(jnp.float32) * inv_std
    shift = beta_ref[0].astype(jnp.float32)

    # Pass 3: normalize + store.  (x - mean)*scale + beta is better conditioned
    # than the fully folded x*scale + shift when |mean| >> std.
    def store_body(i, carry):
        xi = x_ref[i].astype(jnp.float32)
        y_ref[i] = ((xi - mean) * scale + shift).astype(y_ref.dtype)
        return carry

    jax.lax.fori_loop(0, n, store_body, jnp.int32(0), unroll=unroll)


def batchnorm_forward(x, gamma, beta, eps=1e-9):
    """x: (N, C, H, W); gamma/beta: (1, C, 1, 1).  Returns y with x's shape/dtype."""
    N, C, H, W = x.shape
    D = C * H * W
    budget, base_limit, phys, two_core = _vmem_config()

    x2 = x.reshape(N, D)
    gamma2 = jnp.broadcast_to(gamma.reshape(1, C, 1, 1), (1, C, H, W)).reshape(1, D)
    beta2 = jnp.broadcast_to(beta.reshape(1, C, 1, 1), (1, C, H, W)).reshape(1, D)

    D_pad = _round_up(D, _LANES)
    if D_pad != D:
        # TODO(synk): for 128-unaligned D this pad (+ the trailing slice) costs an
        # extra HBM pass; an in-kernel masked tail would remove it.  Not hit when
        # C*H*W is a multiple of 128 (as in the example shape).
        pad = ((0, 0), (0, D_pad - D))
        x2 = jnp.pad(x2, pad)
        gamma2 = jnp.pad(gamma2, pad)
        beta2 = jnp.pad(beta2, pad)
    D128 = D_pad // _LANES

    x3 = x2.reshape(N, D128, _LANES)
    gamma3 = gamma2.reshape(1, D128, _LANES)
    beta3 = beta2.reshape(1, D128, _LANES)

    tb = _pick_tile_rows(D128, N, budget, two_core)
    grid = (_ceil_div(D128, tb),)

    # Guard: make sure the scoped limit covers the chosen working set.
    # TODO(synk): for very large N even a tb=8 block can exceed physical VMEM;
    # a two-phase (stats pass + apply pass) fallback splitting the batch axis
    # would be needed there.
    need = tb * _bytes_per_row(N)
    vmem_limit = max(base_limit, need + 8 * 1024 * 1024)
    vmem_limit = int(min(vmem_limit, phys - 4 * 1024 * 1024))
    vmem_limit = max(vmem_limit, 16 * 1024 * 1024)

    kernel = functools.partial(_batchnorm_kernel, eps=eps)

    y3 = pl.pallas_call(
        kernel,
        out_shape=jax.ShapeDtypeStruct((N, D128, _LANES), x.dtype),
        grid_spec=pltpu.PrefetchScalarGridSpec(
            num_scalar_prefetch=0,
            grid=grid,
            in_specs=[
                pl.BlockSpec((N, tb, _LANES), lambda j: (0, j, 0)),
                pl.BlockSpec((1, tb, _LANES), lambda j: (0, j, 0)),
                pl.BlockSpec((1, tb, _LANES), lambda j: (0, j, 0)),
            ],
            out_specs=pl.BlockSpec((N, tb, _LANES), lambda j: (0, j, 0)),
        ),
        compiler_params=pltpu.CompilerParams(
            dimension_semantics=("parallel",),
            vmem_limit_bytes=vmem_limit,
        ),
    )(x3, gamma3, beta3)

    y2 = y3.reshape(N, D_pad)
    if D_pad != D:
        y2 = y2[:, :D]
    return y2.reshape(N, C, H, W)


def batchnorm_reference(x, gamma, beta, eps=1e-9):
    mean = jnp.mean(x, axis=0)                      # (C,H,W)
    var = jnp.mean((x - mean) ** 2, axis=0)         # biased (correction=0)
    x_hat = (x - mean) / jnp.sqrt(var + eps)
    return gamma * x_hat + beta


if __name__ == "__main__":
    key = jax.random.PRNGKey(0)
    N, C, H, W = 2, 4, 16, 16
    x = jax.random.normal(key, (N, C, H, W), dtype=jnp.float32)

    # Parameter init matching the module: ones / zeros with (1, planes, 1, 1).
    gamma = jnp.ones((1, C, 1, 1), dtype=jnp.float32)
    beta = jnp.zeros((1, C, 1, 1), dtype=jnp.float32)
    eps = 1e-9  # module default (differs from PyTorch BatchNorm's 1e-5 on purpose)

    # TODO(synk): running_mean/running_var EMA bookkeeping is host-side Python
    # state in the PyTorch module; it does not affect the training-mode forward
    # output, so it is not part of the kernel.

    y = jax.block_until_ready(batchnorm_forward(x, gamma, beta, eps))
    y_ref = batchnorm_reference(x, gamma, beta, eps)

    assert y.shape == (N, C, H, W)
    assert jnp.allclose(y, y_ref, atol=1e-5, rtol=1e-5)
    print("KERNEL_OK")
</pallas_src>

<mosaic_0001>
module attributes {stable_mosaic.version = 11 : i64} {
  func.func @_batchnorm_kernel(%arg0: i32, %arg1: memref<2x8x128xf32, #tpu.memory_space<vmem>>, %arg2: memref<1x8x128xf32, #tpu.memory_space<vmem>>, %arg3: memref<1x8x128xf32, #tpu.memory_space<vmem>>, %arg4: memref<2x8x128xf32, #tpu.memory_space<vmem>>) attributes {dimension_semantics = [#tpu.dimension_semantics<parallel>], iteration_bounds = array<i64: 1>, scalar_prefetch = 0 : i64, scratch_operands = 0 : i64, tpu.core_type = #tpu.core_type<tc>, window_params = [{transform_indices = @transform_0, window_bounds = array<i64: 2, 8, 128>}, {transform_indices = @transform_1, window_bounds = array<i64: 1, 8, 128>}, {transform_indices = @transform_2, window_bounds = array<i64: 1, 8, 128>}, {transform_indices = @transform_3, window_bounds = array<i64: 2, 8, 128>}]} {
    %cst = arith.constant 0.000000e+00 : f32
    %0 = vector.broadcast %cst : f32 to vector<8x128xf32>
    %c0_i32 = arith.constant 0 : i32
    %1 = arith.index_cast %c0_i32 : i32 to index
    %c0 = arith.constant 0 : index
    %c0_0 = arith.constant 0 : index
    %2 = vector.load %arg1[%1, %c0, %c0_0] : memref<2x8x128xf32, #tpu.memory_space<vmem>>, vector<1x8x128xf32>
    %3 = vector.shape_cast %2 : vector<1x8x128xf32> to vector<8x128xf32>
    %4 = arith.addf %0, %3 : vector<8x128xf32>
    %c1_i32 = arith.constant 1 : i32
    %5 = arith.index_cast %c1_i32 : i32 to index
    %c0_1 = arith.constant 0 : index
    %c0_2 = arith.constant 0 : index
    %6 = vector.load %arg1[%5, %c0_1, %c0_2] : memref<2x8x128xf32, #tpu.memory_space<vmem>>, vector<1x8x128xf32>
    %7 = vector.shape_cast %6 : vector<1x8x128xf32> to vector<8x128xf32>
    %8 = arith.addf %4, %7 : vector<8x128xf32>
    %c2_i32 = arith.constant 2 : i32
    %cst_3 = arith.constant 5.000000e-01 : f32
    %9 = vector.broadcast %cst_3 : f32 to vector<8x128xf32>
    %10 = arith.mulf %8, %9 : vector<8x128xf32>
    %c0_i32_4 = arith.constant 0 : i32
    %11 = arith.index_cast %c0_i32_4 : i32 to index
    %c0_5 = arith.constant 0 : index
    %c0_6 = arith.constant 0 : index
    %12 = vector.load %arg1[%11, %c0_5, %c0_6] : memref<2x8x128xf32, #tpu.memory_space<vmem>>, vector<1x8x128xf32>
    %13 = vector.shape_cast %12 : vector<1x8x128xf32> to vector<8x128xf32>
    %14 = arith.subf %13, %10 : vector<8x128xf32>
    %15 = arith.mulf %14, %14 : vector<8x128xf32>
    %16 = arith.addf %0, %15 : vector<8x128xf32>
    %c1_i32_7 = arith.constant 1 : i32
    %17 = arith.index_cast %c1_i32_7 : i32 to index
    %c0_8 = arith.constant 0 : index
    %c0_9 = arith.constant 0 : index
    %18 = vector.load %arg1[%17, %c0_8, %c0_9] : memref<2x8x128xf32, #tpu.memory_space<vmem>>, vector<1x8x128xf32>
    %19 = vector.shape_cast %18 : vector<1x8x128xf32> to vector<8x128xf32>
    %20 = arith.subf %19, %10 : vector<8x128xf32>
    %21 = arith.mulf %20, %20 : vector<8x128xf32>
    %22 = arith.addf %16, %21 : vector<8x128xf32>
    %c2_i32_10 = arith.constant 2 : i32
    %cst_11 = arith.constant 5.000000e-01 : f32
    %23 = vector.broadcast %cst_11 : f32 to vector<8x128xf32>
    %24 = arith.mulf %22, %23 : vector<8x128xf32>
    %cst_12 = arith.constant 9.99999971E-10 : f32
    %25 = vector.broadcast %cst_12 : f32 to vector<8x128xf32>
    %26 = arith.addf %24, %25 : vector<8x128xf32>
    %27 = math.rsqrt %26 : vector<8x128xf32>
    %c0_13 = arith.constant 0 : index
    %c0_14 = arith.constant 0 : index
    %c0_15 = arith.constant 0 : index
    %28 = vector.load %arg2[%c0_13, %c0_14, %c0_15] : memref<1x8x128xf32, #tpu.memory_space<vmem>>, vector<1x8x128xf32>
    %29 = vector.shape_cast %28 : vector<1x8x128xf32> to vector<8x128xf32>
    %30 = arith.mulf %29, %27 : vector<8x128xf32>
    %c0_16 = arith.constant 0 : index
    %c0_17 = arith.constant 0 : index
    %c0_18 = arith.constant 0 : index
    %31 = vector.load %arg3[%c0_16, %c0_17, %c0_18] : memref<1x8x128xf32, #tpu.memory_space<vmem>>, vector<1x8x128xf32>
    %32 = vector.shape_cast %31 : vector<1x8x128xf32> to vector<8x128xf32>
    %c0_i32_19 = arith.constant 0 : i32
    %33 = arith.index_cast %c0_i32_19 : i32 to index
    %c0_20 = arith.constant 0 : index
    %c0_21 = arith.constant 0 : index
    %34 = vector.load %arg1[%33, %c0_20, %c0_21] : memref<2x8x128xf32, #tpu.memory_space<vmem>>, vector<1x8x128xf32>
    %35 = vector.shape_cast %34 : vector<1x8x128xf32> to vector<8x128xf32>
    %36 = arith.subf %35, %10 : vector<8x128xf32>
    %37 = arith.mulf %36, %30 : vector<8x128xf32>
    %38 = arith.addf %37, %32 : vector<8x128xf32>
    %39 = arith.index_cast %c0_i32_19 : i32 to index
    %c0_22 = arith.constant 0 : index
    %c0_23 = arith.constant 0 : index
    %40 = vector.load %arg4[%39, %c0_22, %c0_23] : memref<2x8x128xf32, #tpu.memory_space<vmem>>, vector<1x8x128xf32>
    %41 = vector.shape_cast %40 : vector<1x8x128xf32> to vector<8x128xf32>
    %42 = vector.shape_cast %38 : vector<8x128xf32> to vector<1x8x128xf32>
    tpu.vector_store %arg4[%39, %c0_22, %c0_23], %42 {strides = array<i32>} : memref<2x8x128xf32, #tpu.memory_space<vmem>>, vector<1x8x128xf32>,
    %c1_i32_24 = arith.constant 1 : i32
    %43 = arith.index_cast %c1_i32_24 : i32 to index
    %c0_25 = arith.constant 0 : index
    %c0_26 = arith.constant 0 : index
    %44 = vector.load %arg1[%43, %c0_25, %c0_26] : memref<2x8x128xf32, #tpu.memory_space<vmem>>, vector<1x8x128xf32>
    %45 = vector.shape_cast %44 : vector<1x8x128xf32> to vector<8x128xf32>
    %46 = arith.subf %45, %10 : vector<8x128xf32>
    %47 = arith.mulf %46, %30 : vector<8x128xf32>
    %48 = arith.addf %47, %32 : vector<8x128xf32>
    %49 = arith.index_cast %c1_i32_24 : i32 to index
    %c0_27 = arith.constant 0 : index
    %c0_28 = arith.constant 0 : index
    %50 = vector.load %arg4[%49, %c0_27, %c0_28] : memref<2x8x128xf32, #tpu.memory_space<vmem>>, vector<1x8x128xf32>
    %51 = vector.shape_cast %50 : vector<1x8x128xf32> to vector<8x128xf32>
    %52 = vector.shape_cast %48 : vector<8x128xf32> to vector<1x8x128xf32>
    tpu.vector_store %arg4[%49, %c0_27, %c0_28], %52 {strides = array<i32>} : memref<2x8x128xf32, #tpu.memory_space<vmem>>, vector<1x8x128xf32>,
    %c2_i32_29 = arith.constant 2 : i32
    return
  }
  func.func @transform_0(%arg0: i32) -> (i32, i32, i32) {
    %c0_i32 = arith.constant 0 : i32
    %c0_i32_0 = arith.constant 0 : i32
    %c0_i32_1 = arith.constant 0 : i32
    return %c0_i32, %arg0, %c0_i32_0 : i32, i32, i32
  }
  func.func @transform_1(%arg0: i32) -> (i32, i32, i32) {
    %c0_i32 = arith.constant 0 : i32
    %c0_i32_0 = arith.constant 0 : i32
    %c0_i32_1 = arith.constant 0 : i32
    return %c0_i32, %arg0, %c0_i32_0 : i32, i32, i32
  }
  func.func @transform_2(%arg0: i32) -> (i32, i32, i32) {
    %c0_i32 = arith.constant 0 : i32
    %c0_i32_0 = arith.constant 0 : i32
    %c0_i32_1 = arith.constant 0 : i32
    return %c0_i32, %arg0, %c0_i32_0 : i32, i32, i32
  }
  func.func @transform_3(%arg0: i32) -> (i32, i32, i32) {
    %c0_i32 = arith.constant 0 : i32
    %c0_i32_0 = arith.constant 0 : i32
    %c0_i32_1 = arith.constant 0 : i32
    return %c0_i32, %arg0, %c0_i32_0 : i32, i32, i32
  }
}

</mosaic_0001>

<bundles_post_ra>
// kernel: tpu_custom_call.1
= control target key start
LH: loop header
LB: loop body
LE: loop exit
PB: predicated region body
PF: predicated region fallthrough
CT: control target
= control target key end

     0   :  { %8 = vsyncpa [#allocation3], 0  ;;  %s235_s0 = inlined_call_operand.hbm [shape: f32[2,8,128], index: 0, kind: input, shape index: {}]   ;;  %s236_s1 = inlined_call_operand.hbm [shape: f32[1,8,128], index: 1, kind: input, shape index: {}]   ;;  %s237_s2 = inlined_call_operand.hbm [shape: f32[1,8,128], index: 2, kind: input, shape index: {}]   ;;  %s238_s3 = inlined_call_operand.hbm [shape: f32[2,8,128], index: 3, kind: output, shape index: {}]  }
   0x1   :  { %9 = vsyncpa [#allocation6], 0 }
   0x2   :  { %10 = vsyncpa [#allocation4], 0  ;;  %s191_s12 = smov [#allocation5]   ;;  %s192_s14 = smov [#allocation2]  }
   0x3   :  { %s29_s13 = sshll.u32 %s191_s12, 4  ;;  %s16_s15 = sshll.u32 %s192_s14, 4  ;;  %s30_s13 = int_to_ptr.vmem [resolvable:$true] %s29_s13  ;;  %s17_s15 = int_to_ptr.vmem [resolvable:$true] %s16_s15 }
   0x4   :  { %s113_s16 = scalar_lea.vmem %s30_s13, 128  ;;  %p118_p1 = scmp.lt.s32.totalorder %s30_s13, %s30_s13 }
   0x5   :  { %p114_p0 = scmp.ne.s32.totalorder %s30_s13, %s113_s16  ;;  %p119_p2 = scmp.lt.s32.totalorder %s113_s16, %s113_s16 }
   0x7   :  { %p120_p3 = por %p119_p2, %p118_p1 }
   0x9   :  { %p121_p4 = pnand %p120_p3, %p114_p0 }
   0xb   :  { %124 = shalt.err (!%p121_p4)
}
   0xc   :  { %32 = dma.hbm_to_vmem [thread:$0]  %s236_s1, 128, %s30_s13, [#allocation6]  }
   0xd   :  { %s133_s19 = scalar_lea.vmem %s17_s15, 256  ;;  %p138_p6 = scmp.lt.s32.totalorder %s17_s15, %s17_s15 }
   0xe   :  { %p134_p5 = scmp.ne.s32.totalorder %s17_s15, %s133_s19  ;;  %p139_p7 = scmp.lt.s32.totalorder %s133_s19, %s133_s19 }
  0x10   :  { %p140_p8 = por %p139_p7, %p138_p6 }
  0x12   :  { %p141_p9 = pnand %p140_p8, %p134_p5 }
  0x14   :  { %144 = shalt.err (!%p141_p9)
}
  0x15   :  { %s193_s20 = smov 128   ;;  %s194_s21 = smov 8  }
  0x16   :  { %22 = dma.hbm_to_vmem [thread:$0]  %s235_s0, 256, %s17_s15, [#allocation3], %s193_s20, %s193_s20, %s194_s21  }
  0x17   :  { %s195_s24 = smov [#allocation7]  }
  0x18   :  { %s39_s25 = sshll.u32 %s195_s24, 4  ;;  %s40_s25 = int_to_ptr.vmem [resolvable:$true] %s39_s25 }
  0x19   :  { %s153_s1 = scalar_lea.vmem %s40_s25, 128  ;;  %p158_p11 = scmp.lt.s32.totalorder %s40_s25, %s40_s25 }
  0x1a   :  { %p154_p10 = scmp.ne.s32.totalorder %s40_s25, %s153_s1  ;;  %p159_p12 = scmp.lt.s32.totalorder %s153_s1, %s153_s1 }
  0x1c   :  { %p160_p13 = por %p159_p12, %p158_p11 }
  0x1e   :  { %p161_p0 = pnand %p160_p13, %p154_p10 }
  0x20   :  { %164 = shalt.err (!%p161_p0)
}
  0x21   :  { %42 = dma.hbm_to_vmem [thread:$0]  %s237_s2, 128, %s40_s25, [#allocation6]  }
  0x22   :  { %185 = dma.done.wait [#allocation3], 256  }
  0x23   :  { %186 = vsyncadd [#allocation3], 4294967040 }
  0x24   :  { %187 = dma.done.wait [#allocation6], 256  }
  0x25   :  { %188 = vsyncadd [#allocation6], 4294967040  ;;  %v52_v0 = vld [vmem:[#allocation2] sm:$0xff]  ;;  %v55_v1 = vld [vmem:[#allocation2 + $0x8] sm:$0xff]  ;;  %s196_s0 = smov [#allocation8]  }
  0x26   :  { %v56_v2 = vadd.f32 %v55_v1, %v52_v0  ;;  %v67_v11 = vld [vmem:[#allocation5] sm:$0xff]  ;;  %v69_v14 = vld [vmem:[#allocation7] sm:$0xff]  ;;  %s84_s2 = sshll.u32 %s196_s0, 4  ;;  %s85_s2 = int_to_ptr.vmem [resolvable:$true] %s84_s2 }
  0x27   :  { %s165_s28 = scalar_lea.vmem %s85_s2, 256  ;;  %p170_p2 = scmp.lt.s32.totalorder %s85_s2, %s85_s2 }
  0x28   :  { %v57_v3 = vmul.f32 0.5, %v56_v2  ;;  %p166_p1 = scmp.ne.s32.totalorder %s85_s2, %s165_s28  ;;  %p171_p3 = scmp.lt.s32.totalorder %s165_s28, %s165_s28 }
  0x2a   :  { %v58_v4 = vsub.f32 %v52_v0, %v57_v3  ;;  %v61_v5 = vsub.f32 %v55_v1, %v57_v3  ;;  %p172_p4 = por %p171_p3, %p170_p2 }
  0x2c   :  { %v59_v6 = vmul.f32 %v58_v4, %v58_v4  ;;  %v62_v7 = vmul.f32 %v61_v5, %v61_v5  ;;  %p173_p5 = pnand %p172_p4, %p166_p1 }
  0x2e   :  { %v63_v8 = vadd.f32 %v62_v7, %v59_v6 }
  0x30   :  { %v64_v9 = vmul.f32 0.5, %v63_v8 }
  0x32   :  { %v65_v10 = vadd.f32 1e-09, %v64_v9 }
  0x34   :  { %103 = vrsqrt.f32 %v65_v10 }
  0x41   :  { %v104_v12 = vpop.eup %103 }
  0x42   :  { %v68_v13 = vmul.f32 %v104_v12, %v67_v11 }
  0x44   :  { %v70_v15 = vmul.f32 %v68_v13, %v58_v4  ;;  %v75_v16 = vmul.f32 %v68_v13, %v61_v5 }
  0x46   :  { %v71_v17 = vadd.f32 %v70_v15, %v69_v14  ;;  %v76_v18 = vadd.f32 %v75_v16, %v69_v14 }
  0x48   :  { %72 = vst [vmem:[#allocation8] sm:$0xff] %v71_v17  ;;  %78 = vst [vmem:[#allocation8 + $0x8] sm:$0xff] %v76_v18 }
  0x49   :  { %176 = shalt.err (!%p173_p5)
}
  0x4a   :  { %90 = dma.vmem_to_hbm [thread:$0]  %s85_s2, 256, %s238_s3, [#allocation4], %s193_s20, %s193_s20, %s194_s21  }
  0x4b   :  { %189 = dma.done.wait [#allocation4], 256  }
  0x4c   :  { %190 = vsyncadd [#allocation4], 4294967040 }
  0x4d   :  { %94 = vsyncpa [#allocation3], 1 }
  0x4e   :  { %95 = vsyncpa [#allocation6], 1 }
  0x4f   :  { %96 = vsyncpa [#allocation4], 1 }

</bundles_post_ra>
